<compile_context>
chip_gen: v7x
topology: tpu7x:2x2x1
jax: 0.10.0
libtpu: 0.0.40
codegen_flags: <defaults>
</compile_context>

<pallas_src>
import jax
import jax.numpy as jnp
from jax.experimental import pallas as pl
from jax.experimental.pallas import tpu as pltpu


# ---------------------------------------------------------------------------
# Kernels
# ---------------------------------------------------------------------------

def gcn_fused_kernel(a_ref, t_ref, b1_ref, w2_ref, b2_ref, o_ref):
    """Both GCN layers with A fully resident in VMEM (single grid step)."""
    # A arrives as int8 (HBM byte savings); upcast on the VPU (sits in DMA slack).
    a_f32 = a_ref[...].astype(jnp.float32)
    a_bf16 = a_f32.astype(jnp.bfloat16)
    # Layer 1: h = relu(A @ t + b1), bf16 MXU inputs with f32 accumulation.
    h = jnp.dot(a_bf16, t_ref[...], preferred_element_type=jnp.float32)
    h = jnp.maximum(h + b1_ref[...], 0.0)
    # z = h @ W2^T (tiny H-contraction, f32; W2 kept in torch (O, H) layout).
    z = jax.lax.dot_general(
        h, w2_ref[...],
        dimension_numbers=(((1,), (1,)), ((), ())),
        preferred_element_type=jnp.float32)
    # Layer 2: out = A @ z + b2 (z stays f32 -> no compounding rounding through the N-sum).
    out = jnp.dot(a_f32, z, preferred_element_type=jnp.float32)
    o_ref[...] = out + b2_ref[...]


def gcn_layer1z_kernel(a_ref, t_ref, b1_ref, w2_ref, z_ref):
    """Row-tiled layer 1 that directly emits z = relu(A_tile @ t + b1) @ W2^T."""
    a_bf16 = a_ref[...].astype(jnp.float32).astype(jnp.bfloat16)
    h = jnp.dot(a_bf16, t_ref[...], preferred_element_type=jnp.float32)
    h = jnp.maximum(h + b1_ref[...], 0.0)
    z_ref[...] = jax.lax.dot_general(
        h, w2_ref[...],
        dimension_numbers=(((1,), (1,)), ((), ())),
        preferred_element_type=jnp.float32)


def gcn_agg2_kernel(a_ref, z_ref, b2_ref, o_ref):
    """Row-tiled layer 2: out = A_tile @ z + b2 (z precomputed by layer 1, kept f32)."""
    a_f32 = a_ref[...].astype(jnp.float32)
    o_ref[...] = jnp.dot(a_f32, z_ref[...], preferred_element_type=jnp.float32) + b2_ref[...]


# ---------------------------------------------------------------------------
# Wrapper
# ---------------------------------------------------------------------------

def _round_up(x, m):
    return ((x + m - 1) // m) * m


def simple_gcn_forward(adj, features, w1, b1, w2, b2, *, tm_max=256, fuse_max_n=512):
    """adj: (N, N) dense adjacency, adj[dst, src] = multiplicity of edge src->dst.
    features: (N, F) f32.  w1: (H, F), b1: (H,), w2: (O, H), b2: (O,)  (torch Linear layout)."""
    n, _f = features.shape
    h_dim = w1.shape[0]
    o_dim = w2.shape[0]

    # int8 adjacency storage is exact only for edge multiplicities < 128.
    # (Eager-only sanity check; hoist it out if wrapping this function in jit.)
    assert float(jnp.max(adj)) < 127.0, "int8 adjacency storage requires edge multiplicity < 128"

    # Pad node count to a multiple of 32 (int8 native sublane tiling; also covers bf16's 16).
    n_pad = _round_up(max(n, 32), 32)
    fused = n_pad <= fuse_max_n
    if not fused:
        tm = min(_round_up(tm_max, 32), n_pad)
        if n_pad // tm < 2:
            # v7x has 2 TensorCores: make the "parallel" row axis span at least 2 grid steps.
            tm = max(32, _round_up(n_pad // 2, 32))
        n_pad = _round_up(n_pad, tm)

    # --- wrapper-side prep (all O(N*H) or smaller; negligible next to the O(N^2) aggregation) ---
    adj_i8 = jnp.zeros((n_pad, n_pad), jnp.int8).at[:n, :n].set(adj.astype(jnp.int8))
    # t = X @ W1^T : a (N,F)x(F,H) matmul with F=3 is not worth an MXU pass; do it once here.
    t = features.astype(jnp.float32) @ w1.astype(jnp.float32).T
    t_p = jnp.zeros((n_pad, h_dim), jnp.bfloat16).at[:n, :].set(t.astype(jnp.bfloat16))
    b1_2d = b1.reshape(1, h_dim).astype(jnp.float32)
    w2_f32 = w2.astype(jnp.float32)   # tiny; kept f32 so z stays f32
    b2_2d = b2.reshape(1, o_dim).astype(jnp.float32)
    # NOTE: padded rows of t are zero -> padded rows of h become relu(b1) != 0, but A's padded
    # *columns* are zero so they never contribute, and padded output rows are sliced off below.

    if fused:
        # One call, one read of A from HBM, no h/z round trip. grid=(1,).
        out_padded = pl.pallas_call(
            gcn_fused_kernel,
            out_shape=jax.ShapeDtypeStruct((n_pad, o_dim), jnp.float32),
            grid=(1,),
            in_specs=[
                pl.BlockSpec((n_pad, n_pad), lambda i: (0, 0)),   # A (int8, full)
                pl.BlockSpec((n_pad, h_dim), lambda i: (0, 0)),   # t = X @ W1^T (bf16)
                pl.BlockSpec((1, h_dim), lambda i: (0, 0)),       # b1
                pl.BlockSpec((o_dim, h_dim), lambda i: (0, 0)),   # W2 (torch layout, f32)
                pl.BlockSpec((1, o_dim), lambda i: (0, 0)),       # b2
            ],
            out_specs=pl.BlockSpec((n_pad, o_dim), lambda i: (0, 0)),
            compiler_params=pltpu.CompilerParams(dimension_semantics=("arbitrary",)),
            cost_estimate=pl.CostEstimate(
                flops=2 * n_pad * n_pad * h_dim
                + 2 * n_pad * h_dim * o_dim
                + 2 * n_pad * n_pad * o_dim,
                transcendentals=0,
                bytes_accessed=n_pad * n_pad                # A int8
                + 2 * n_pad * h_dim                          # t bf16
                + 4 * (h_dim + o_dim * h_dim + o_dim)        # biases + W2
                + 4 * n_pad * o_dim),                        # out f32
        )(adj_i8, t_p, b1_2d, w2_f32, b2_2d)
        return out_padded[:n]

    # ------- tiled two-call path (larger graphs) -------
    grid_rows = n_pad // tm
    cparams = pltpu.CompilerParams(dimension_semantics=("parallel",))

    # ---- call 1: z = relu(A_tile @ t + b1) @ W2^T, row-tiled over A ----
    z_padded = pl.pallas_call(
        gcn_layer1z_kernel,
        out_shape=jax.ShapeDtypeStruct((n_pad, o_dim), jnp.float32),
        grid=(grid_rows,),
        in_specs=[
            pl.BlockSpec((tm, n_pad), lambda i: (i, 0)),      # A row strip (int8)
            pl.BlockSpec((n_pad, h_dim), lambda i: (0, 0)),   # t (grid-invariant)
            pl.BlockSpec((1, h_dim), lambda i: (0, 0)),       # b1
            pl.BlockSpec((o_dim, h_dim), lambda i: (0, 0)),   # W2
        ],
        out_specs=pl.BlockSpec((tm, o_dim), lambda i: (i, 0)),
        compiler_params=cparams,
        cost_estimate=pl.CostEstimate(
            flops=2 * n_pad * n_pad * h_dim + 2 * n_pad * h_dim * o_dim,
            transcendentals=0,
            bytes_accessed=n_pad * n_pad + 2 * n_pad * h_dim
            + 4 * (h_dim + o_dim * h_dim) + 4 * n_pad * o_dim),
    )(adj_i8, t_p, b1_2d, w2_f32)

    # ---- call 2: out = A_tile @ z + b2, row-tiled over A (z computed once above) ----
    out_padded = pl.pallas_call(
        gcn_agg2_kernel,
        out_shape=jax.ShapeDtypeStruct((n_pad, o_dim), jnp.float32),
        grid=(grid_rows,),
        in_specs=[
            pl.BlockSpec((tm, n_pad), lambda i: (i, 0)),      # A row strip (int8)
            pl.BlockSpec((n_pad, o_dim), lambda i: (0, 0)),   # z (grid-invariant, f32)
            pl.BlockSpec((1, o_dim), lambda i: (0, 0)),       # b2
        ],
        out_specs=pl.BlockSpec((tm, o_dim), lambda i: (i, 0)),
        compiler_params=cparams,
        cost_estimate=pl.CostEstimate(
            flops=2 * n_pad * n_pad * o_dim,
            transcendentals=0,
            bytes_accessed=n_pad * n_pad + 4 * n_pad * o_dim
            + 4 * o_dim + 4 * n_pad * o_dim),
    )(adj_i8, z_padded, b2_2d)

    return out_padded[:n]


# ---------------------------------------------------------------------------
# Self-test
# ---------------------------------------------------------------------------

if __name__ == "__main__":
    # ---- test 1: the reference configuration (13 nodes, constant-1 weights; fused path) ----
    features = jnp.array([[1.0, float(i + 1), 1.0] for i in range(13)], dtype=jnp.float32)
    n_nodes, in_feats = features.shape
    hidden_feats, out_feats = 32, 8

    # The reference script leaves (u, v) unspecified; use a deterministic directed ring.
    u = jnp.arange(n_nodes, dtype=jnp.int32)
    v = (u + 1) % n_nodes
    adj = jnp.zeros((n_nodes, n_nodes), jnp.float32).at[v, u].add(1.0)   # A[dst, src] += 1

    w1 = jnp.ones((hidden_feats, in_feats), jnp.float32)   # nn.init.constant_(weight, 1)
    b1 = jnp.ones((hidden_feats,), jnp.float32)
    w2 = jnp.ones((out_feats, hidden_feats), jnp.float32)
    b2 = jnp.ones((out_feats,), jnp.float32)

    out = jax.block_until_ready(simple_gcn_forward(adj, features, w1, b1, w2, b2))

    hr = adj @ features
    hr = jnp.maximum(hr @ w1.T + b1, 0.0)
    ref = (adj @ hr) @ w2.T + b2
    assert out.shape == (n_nodes, out_feats)
    assert jnp.allclose(out, ref, rtol=1e-2, atol=1e-2), (out, ref)

    # ---- test 2: larger deterministic random graph to exercise the row-tiled 2-call path ----
    key = jax.random.PRNGKey(0)
    k1, k2, k3, k4, k5, k6 = jax.random.split(key, 6)
    n2 = 600
    adj2 = (jax.random.uniform(k1, (n2, n2)) < 0.02).astype(jnp.float32)
    feat2 = jax.random.normal(k2, (n2, in_feats), jnp.float32)
    w1r = 0.2 * jax.random.normal(k3, (hidden_feats, in_feats), jnp.float32)
    b1r = 0.1 * jax.random.normal(k4, (hidden_feats,), jnp.float32)
    w2r = 0.2 * jax.random.normal(k5, (out_feats, hidden_feats), jnp.float32)
    b2r = 0.1 * jax.random.normal(k6, (out_feats,), jnp.float32)

    out2 = jax.block_until_ready(simple_gcn_forward(adj2, feat2, w1r, b1r, w2r, b2r))
    hr2 = adj2 @ feat2
    hr2 = jnp.maximum(hr2 @ w1r.T + b1r, 0.0)
    ref2 = (adj2 @ hr2) @ w2r.T + b2r
    assert out2.shape == (n2, out_feats)
    rel_err = float(jnp.linalg.norm(out2 - ref2) / (jnp.linalg.norm(ref2) + 1e-6))
    assert rel_err < 3e-2, rel_err   # bf16 t / bf16 MXU inputs with f32 accumulation

    print("KERNEL_OK")
</pallas_src>

<mosaic_0001>
module attributes {stable_mosaic.version = 11 : i64} {
  func.func @gcn_fused_kernel(%arg0: i32, %arg1: memref<32x32xi8, #tpu.memory_space<vmem>>, %arg2: memref<32x32xbf16, #tpu.memory_space<vmem>>, %arg3: memref<1x32xf32, #tpu.memory_space<vmem>>, %arg4: memref<8x32xf32, #tpu.memory_space<vmem>>, %arg5: memref<1x8xf32, #tpu.memory_space<vmem>>, %arg6: memref<32x8xf32, #tpu.memory_space<vmem>>) attributes {dimension_semantics = [#tpu.dimension_semantics<arbitrary>], iteration_bounds = array<i64: 1>, scalar_prefetch = 0 : i64, scratch_operands = 0 : i64, tpu.core_type = #tpu.core_type<tc>, window_params = [{pipeline_mode = #tpu.pipeline_mode<synchronous>, transform_indices = @transform_0, window_bounds = array<i64: 32, 32>}, {pipeline_mode = #tpu.pipeline_mode<synchronous>, transform_indices = @transform_1, window_bounds = array<i64: 32, 32>}, {pipeline_mode = #tpu.pipeline_mode<synchronous>, transform_indices = @transform_2, window_bounds = array<i64: 1, 32>}, {pipeline_mode = #tpu.pipeline_mode<synchronous>, transform_indices = @transform_3, window_bounds = array<i64: 8, 32>}, {pipeline_mode = #tpu.pipeline_mode<synchronous>, transform_indices = @transform_4, window_bounds = array<i64: 1, 8>}, {pipeline_mode = #tpu.pipeline_mode<synchronous>, transform_indices = @transform_5, window_bounds = array<i64: 32, 8>}]} {
    %c0 = arith.constant 0 : index
    %c0_0 = arith.constant 0 : index
    %0 = vector.load %arg1[%c0, %c0_0] : memref<32x32xi8, #tpu.memory_space<vmem>>, vector<32x32xi8>
    %1 = arith.sitofp %0 : vector<32x32xi8> to vector<32x32xf32>
    %2 = arith.truncf %1 : vector<32x32xf32> to vector<32x32xbf16>
    %c0_1 = arith.constant 0 : index
    %c0_2 = arith.constant 0 : index
    %3 = vector.load %arg2[%c0_1, %c0_2] : memref<32x32xbf16, #tpu.memory_space<vmem>>, vector<32x32xbf16>
    %cst = arith.constant dense<0.000000e+00> : vector<32x32xf32>
    %4 = tpu.matmul %2, %3, %cst {dimension_numbers = #tpu.dot_dimension_numbers<[1], [0], [0], [1], [0, 0, 1, 1], [], []>} : vector<32x32xbf16>, vector<32x32xbf16>, vector<32x32xf32> -> vector<32x32xf32>
    %c0_3 = arith.constant 0 : index
    %c0_4 = arith.constant 0 : index
    %5 = vector.load %arg3[%c0_3, %c0_4] : memref<1x32xf32, #tpu.memory_space<vmem>>, vector<1x32xf32>
    %6 = vector.broadcast %5 : vector<1x32xf32> to vector<32x32xf32>
    %7 = arith.addf %4, %6 : vector<32x32xf32>
    %cst_5 = arith.constant 0.000000e+00 : f32
    %8 = vector.broadcast %cst_5 : f32 to vector<32x32xf32>
    %9 = arith.maximumf %7, %8 : vector<32x32xf32>
    %c0_6 = arith.constant 0 : index
    %c0_7 = arith.constant 0 : index
    %10 = vector.load %arg4[%c0_6, %c0_7] : memref<8x32xf32, #tpu.memory_space<vmem>>, vector<8x32xf32>
    %cst_8 = arith.constant dense<0.000000e+00> : vector<32x8xf32>
    %11 = tpu.matmul %9, %10, %cst_8 {dimension_numbers = #tpu.dot_dimension_numbers<[1], [1], [0], [0], [0, 0, 1, 0], [], []>} : vector<32x32xf32>, vector<8x32xf32>, vector<32x8xf32> -> vector<32x8xf32>
    %cst_9 = arith.constant dense<0.000000e+00> : vector<32x8xf32>
    %12 = tpu.matmul %1, %11, %cst_9 {dimension_numbers = #tpu.dot_dimension_numbers<[1], [0], [0], [1], [0, 0, 1, 1], [], []>} : vector<32x32xf32>, vector<32x8xf32>, vector<32x8xf32> -> vector<32x8xf32>
    %c0_10 = arith.constant 0 : index
    %c0_11 = arith.constant 0 : index
    %13 = vector.load %arg5[%c0_10, %c0_11] : memref<1x8xf32, #tpu.memory_space<vmem>>, vector<1x8xf32>
    %14 = vector.broadcast %13 : vector<1x8xf32> to vector<32x8xf32>
    %15 = arith.addf %12, %14 : vector<32x8xf32>
    %c0_12 = arith.constant 0 : index
    %c0_13 = arith.constant 0 : index
    %16 = vector.load %arg6[%c0_12, %c0_13] : memref<32x8xf32, #tpu.memory_space<vmem>>, vector<32x8xf32>
    tpu.vector_store %arg6[%c0_12, %c0_13], %15 {strides = array<i32>} : memref<32x8xf32, #tpu.memory_space<vmem>>, vector<32x8xf32>,
    return
  }
  func.func @transform_0(%arg0: i32) -> (i32, i32) {
    %c0_i32 = arith.constant 0 : i32
    %c0_i32_0 = arith.constant 0 : i32
    %c0_i32_1 = arith.constant 0 : i32
    return %c0_i32, %c0_i32_0 : i32, i32
  }
  func.func @transform_1(%arg0: i32) -> (i32, i32) {
    %c0_i32 = arith.constant 0 : i32
    %c0_i32_0 = arith.constant 0 : i32
    %c0_i32_1 = arith.constant 0 : i32
    return %c0_i32, %c0_i32_0 : i32, i32
  }
  func.func @transform_2(%arg0: i32) -> (i32, i32) {
    %c0_i32 = arith.constant 0 : i32
    %c0_i32_0 = arith.constant 0 : i32
    %c0_i32_1 = arith.constant 0 : i32
    return %c0_i32, %c0_i32_0 : i32, i32
  }
  func.func @transform_3(%arg0: i32) -> (i32, i32) {
    %c0_i32 = arith.constant 0 : i32
    %c0_i32_0 = arith.constant 0 : i32
    %c0_i32_1 = arith.constant 0 : i32
    return %c0_i32, %c0_i32_0 : i32, i32
  }
  func.func @transform_4(%arg0: i32) -> (i32, i32) {
    %c0_i32 = arith.constant 0 : i32
    %c0_i32_0 = arith.constant 0 : i32
    %c0_i32_1 = arith.constant 0 : i32
    return %c0_i32, %c0_i32_0 : i32, i32
  }
  func.func @transform_5(%arg0: i32) -> (i32, i32) {
    %c0_i32 = arith.constant 0 : i32
    %c0_i32_0 = arith.constant 0 : i32
    %c0_i32_1 = arith.constant 0 : i32
    return %c0_i32, %c0_i32_0 : i32, i32
  }
}

</mosaic_0001>

<bundles_post_ra>
// kernel: tpu_custom_call.1
= control target key start
LH: loop header
LB: loop body
LE: loop exit
PB: predicated region body
PF: predicated region fallthrough
CT: control target
= control target key end

     0   :  { %10 = vsyncpa [#allocation3], 0  ;;  %s579_s0 = inlined_call_operand.hbm [shape: s8[32,32], index: 0, kind: input, shape index: {}]   ;;  %s580_s1 = inlined_call_operand.hbm [shape: bf16[32,32], index: 1, kind: input, shape index: {}]   ;;  %s581_s2 = inlined_call_operand.vmem [shape: f32[1,32], index: 2, kind: input, shape index: {}]   ;;  %s582_s3 = inlined_call_operand.vmem [shape: f32[8,32], index: 3, kind: input, shape index: {}]   ;;  %s583_s4 = inlined_call_operand.vmem [shape: f32[1,8], index: 4, kind: input, shape index: {}]   ;;  %s584_s5 = inlined_call_operand.vmem [shape: f32[32,8], index: 5, kind: output, shape index: {}]  }
   0x1   :  { %11 = vsyncpa [#allocation5], 0  ;;  %s481_s18 = smov [#allocation2]   ;;  %s482_s20 = smov [#allocation4]  }
   0x2   :  { %s18_s19 = sshll.u32 %s481_s18, 4  ;;  %s27_s21 = sshll.u32 %s482_s20, 4  ;;  %s19_s19 = int_to_ptr.vmem [resolvable:$true] %s18_s19  ;;  %s515_s21 = int_to_ptr.vmem [resolvable:$true] %s27_s21 }
   0x3   :  { %s433_s24 = scalar_lea.hbm %s579_s0, 128 }
   0x4   :  { %p434_p0 = scmp.ne.s32.totalorder %s579_s0, %s433_s24  ;;  %p437_p1 = scmp.lt.u32.totalorder %s433_s24, %s579_s0 }
   0x6   :  { %p439_p2 = pnand %p437_p1, %p434_p0 }
   0x8   :  { %442 = shalt.err (!%p439_p2)
}
   0x9   :  { %s443_s29 = scalar_lea.vmem %s19_s19, 128  ;;  %p448_p4 = scmp.lt.s32.totalorder %s19_s19, %s19_s19 }
   0xa   :  { %p444_p3 = scmp.ne.s32.totalorder %s19_s19, %s443_s29  ;;  %p449_p5 = scmp.lt.s32.totalorder %s443_s29, %s443_s29 }
   0xc   :  { %p450_p6 = por %p449_p5, %p448_p4 }
   0xe   :  { %p451_p7 = pnand %p450_p6, %p444_p3 }
  0x10   :  { %454 = shalt.err (!%p451_p7)
}
  0x11   :  { %21 = dma.hbm_to_vmem [thread:$0]  %s579_s0, 128, %s19_s19, [#allocation3]  }
  0x12   :  { %s455_s9 = scalar_lea.hbm %s580_s1, 256 }
  0x13   :  { %p456_p8 = scmp.ne.s32.totalorder %s580_s1, %s455_s9  ;;  %p459_p9 = scmp.lt.u32.totalorder %s455_s9, %s580_s1 }
  0x15   :  { %p461_p10 = pnand %p459_p9, %p456_p8 }
  0x17   :  { %464 = shalt.err (!%p461_p10)
}
  0x18   :  { %s465_s14 = scalar_lea.vmem %s515_s21, 256  ;;  %p470_p12 = scmp.lt.s32.totalorder %s515_s21, %s515_s21 }
  0x19   :  { %p466_p11 = scmp.ne.s32.totalorder %s515_s21, %s465_s14  ;;  %p471_p13 = scmp.lt.s32.totalorder %s465_s14, %s465_s14 }
  0x1b   :  { %p472_p0 = por %p471_p13, %p470_p12 }
  0x1d   :  { %p473_p1 = pnand %p472_p0, %p466_p11 }
  0x1f   :  { %476 = shalt.err (!%p473_p1)
}
  0x20   :  { %s483_s0 = smov 64   ;;  %s484_s15 = smov 4  }
  0x21   :  { %33 = dma.hbm_to_vmem [thread:$0]  %s580_s1, 256, %s515_s21, [#allocation5], %s483_s0, %s483_s0, %s484_s15  }
  0x22   :  { %477 = dma.done.wait [#allocation3], 128  }
  0x23   :  { %478 = vsyncadd [#allocation3], 4294967168 }
  0x24   :  { %479 = dma.done.wait [#allocation5], 256  }
  0x25   :  { %480 = vsyncadd [#allocation5], 4294967040  ;;  %v431_v0 = vld [vmem:[#allocation4] sm:$0xff]   ;;  %v432_v1 = vld [vmem:[#allocation4 + $0x8] sm:$0xff]   ;;  %vm81_vm0 = vcmask 261120   ;;  %vm346_vm1 = vcmask 64512  }
  0x26   :  { %389 = vmatprep.subr.bf16.mxu0 %v431_v0  ;;  %v47_v2 = vld [vmem:[#allocation2] sm:$0xff] }
  0x27   :  { %390 = vmatpush3.bf16.msra.mxu0 %v431_v0  ;;  %v56_v3 = vunpack.c.l.s8.bf16 %v47_v2  ;;  %v57_v4 = vunpack.c.h.s8.bf16 %v47_v2  ;;  %v141_v5 = vld [vmem:[%s582_s3] sm:$0xff]  ;;  %v48_v19 = vunpack.c.0.s8 %v47_v2  ;;  %v49_v25 = vunpack.c.1.s8 %v47_v2 }
  0x28   :  { %391 = vmatprep.subr.bf16.mxu0 %v432_v1  ;;  %397 = vmatprep.subr.msk.mxu1 %vm81_vm0, %v141_v5  ;;  %v357_v6 = vld [vmem:[%s581_s2] ss:$0 sm:$0xff]  ;;  %v50_v27 = vunpack.c.2.s8 %v47_v2  ;;  %v51_v30 = vunpack.c.3.s8 %v47_v2 }
  0x29   :  { %393 = vmatprep.mubr.msk.bf16.mxu0 %vm81_vm0, %v56_v3  ;;  %398 = vmatpush3.xpose.msk.msra.mxu1 %vm81_vm0, %v141_v5  ;;  %v52_v20 = vcvt.s32.f32 %v48_v19  ;;  %v53_v29 = vcvt.s32.f32 %v49_v25  ;;  %v367_v33 = vld [vmem:[%s583_s4] ss:$0 sm:$0xff] }
  0x2a   :  { %v54_v31 = vcvt.s32.f32 %v50_v27  ;;  %v55_v32 = vcvt.s32.f32 %v51_v30 }
  0x2b   :  { %392 = vmatpush3.bf16.msra.mxu0 %v432_v1 }
  0x2e   :  { %394 = vmatmul.mubr.msk.bf16.vlgmr.msra.gmra.mrb[0].mxu0 %vm81_vm0, %v57_v4 }
 0x101   :  { %v395_v7 = vpop.f32.mrb[0].mxu0 }
 0x102   :  { %v122_v8 = vpop.f32.mrb[1].mxu0  ;;  %v131_v11 = vadd.f32 %v395_v7, %v357_v6 }
 0x103   :  { %v123_v9 = vadd.f32 %v357_v6, %v122_v8  ;;  %v396_v10 = vpop.f32.mrb[2].mxu0 }
 0x104   :  { %v125_v12 = vpop.f32.mrb[3].mxu0  ;;  %v134_v15 = vadd.f32 %v396_v10, %v357_v6  ;;  %v139_v17 = vmax.f32 %v131_v11, 0.0 }
 0x105   :  { %v137_v13 = vmax.f32 %v123_v9, 0.0  ;;  %v126_v14 = vadd.f32 %v357_v6, %v125_v12 }
 0x106   :  { %v140_v18 = vmax.f32 %v134_v15, 0.0 }
 0x107   :  { %v138_v16 = vmax.f32 %v126_v14, 0.0  ;;  %399 = vmatprep.mubr.msk.f32.mxu1 %vm81_vm0, %v137_v13 }
 0x109   :  { %400 = vmatmul.mubr.msk.f32.vlgmr.msra.gmra.mrb[0].mxu1 %vm81_vm0, %v138_v16 }
 0x10a   :  { %402 = vmatprep.mubr.msk.f32.mxu1 %vm81_vm0, %v139_v17 }
 0x10d   :  { %403 = vmatmul.mubr.msk.f32.gmra.mrb[2].mxu1 %vm81_vm0, %v140_v18 }
 0x10e   :  { %413 = vmatprep.mubr.msk.f32.mxu1 %vm81_vm0, %v52_v20 }
 0x1dc   :  { %v401_v21 = vpop.f32.mrb[0].mxu1 }
 0x1dd   :  { %v223_v22 = vpop.f32.mrb[1].mxu1 }
 0x1de   :  { %v419_v23 = vpack.c.bf16 %v401_v21, %v223_v22 }
 0x1e0   :  { %v404_v24 = vpop.f32.mrb[2].mxu1  ;;  %420 = vmatprep.subr.bf16.mxu1 %v419_v23 }
 0x1e1   :  { %v233_v26 = vpop.f32.mrb[3].mxu1  ;;  %422 = vmatpush3.bf16.msra.mxu1 %v419_v23 }
 0x1e2   :  { %v423_v28 = vpack.c.bf16 %v404_v24, %v233_v26 }
 0x1e4   :  { %424 = vmatprep.subr.bf16.mxu1 %v423_v28 }
 0x1e5   :  { %426 = vmatpush3.bf16.msra.mxu1 %v423_v28 }
 0x1e8   :  { %414 = vmatmul.mubr.msk.f32.vlgmr.msra.gmra.mrb[4].mxu1 %vm81_vm0, %v53_v29 }
 0x1e9   :  { %416 = vmatprep.mubr.msk.f32.mxu1 %vm81_vm0, %v54_v31 }
 0x1ec   :  { %417 = vmatmul.mubr.msk.f32.gmra.mrb[6].mxu1 %vm81_vm0, %v55_v32 }
 0x2bb   :  { %v415_v34 = vpop.f32.mrb[4].mxu1 }
 0x2bc   :  { %v333_v35 = vadd.f32 %v415_v34, %v367_v33  ;;  %v327_v36 = vpop.f32.mrb[5].mxu1 }
 0x2bd   :  { %v328_v37 = vadd.f32 %v367_v33, %v327_v36 }
 0x2be   :  { %348 = vst.msk [vmem:[%s584_s5 + $0x8] sm:$0xff] %vm346_vm1, %v333_v35 }
 0x2bf   :  { %347 = vst.msk [vmem:[%s584_s5] sm:$0xff] %vm346_vm1, %v328_v37  ;;  %v418_v38 = vpop.f32.mrb[6].mxu1 }
 0x2c0   :  { %v343_v39 = vadd.f32 %v418_v38, %v367_v33  ;;  %v337_v40 = vpop.f32.mrb[7].mxu1 }
 0x2c1   :  { %v338_v41 = vadd.f32 %v367_v33, %v337_v40 }
 0x2c2   :  { %350 = vst.msk [vmem:[%s584_s5 + $0x18] sm:$0xff] %vm346_vm1, %v343_v39 }
 0x2c3   :  { %349 = vst.msk [vmem:[%s584_s5 + $0x10] sm:$0xff] %vm346_vm1, %v338_v41 }
 0x2c4   :  { %355 = vsyncpa [#allocation3], 1 }
 0x2c5   :  { %356 = vsyncpa [#allocation5], 1 }

</bundles_post_ra>
